<compile_context>
chip_gen: v7x
topology: tpu7x:2x2x1
jax: 0.10.0
libtpu: 0.0.40
codegen_flags: <defaults>
</compile_context>

<pallas_src>
import math
import functools
import numpy as np
import jax
import jax.numpy as jnp
from jax.experimental import pallas as pl
from jax.experimental.pallas import tpu as pltpu

LANES = 128
MAX_TILE_ROWS = 256      # sublane rows per tile: 256*128*4B = 128 KiB per f32 plane
RAW_PAD = -30.0          # pad value for raw logits: sigmoid(-30)~0, exp(-30)~0


# ----------------------------- config (stands in for the global `cfg`) ------
class _Cfg:
    max_boxes = 4
    neg_ratio = 'full'   # deterministic: keep every (batch, meta-class) row


cfg = _Cfg()


# ----------------------------- Pallas kernels -------------------------------
def _sigmoid(v):
    # reciprocal goes to the EUP slot (approx) instead of a VALU divide
    return pl.reciprocal(1.0 + jnp.exp(-v), approx=True)


def decode_kernel(raw_ref, aux_ref, pred_ref):
    # raw_ref : (5, TR, 128)  raw conv outputs [tx, ty, tw, th, tconf]
    # aux_ref : (4, TR, 128)  [grid_x, grid_y, anchor_w, anchor_h] (pre-materialized)
    # pred_ref: (4, TR, 128)  decoded boxes [cx, cy, bw, bh]
    pred_ref[0] = _sigmoid(raw_ref[0]) + aux_ref[0]
    pred_ref[1] = _sigmoid(raw_ref[1]) + aux_ref[1]
    pred_ref[2] = jnp.exp(raw_ref[2]) * aux_ref[2]
    pred_ref[3] = jnp.exp(raw_ref[3]) * aux_ref[3]


def loss_ce_kernel(raw_ref, tm_ref, cls_ref, lm_ref, out_ref, acc_ref, *,
                   n_meta, nt_ce):
    # raw_ref: (5, TRL, 128)  raw [tx, ty, tw, th, tconf]  (activations recomputed here)
    # tm_ref : (7, TRL, 128)  [tx, ty, tw, th, tconf, coord_mask, sqrt(conf_mask)]
    # cls_ref: (n_meta, TRC, 128) meta-class logits, lane-dense
    # lm_ref : (2, TRC, 128)  [label, ce_mask]
    # out_ref: SMEM (4,) f32  [coord_sq_sum, conf_sq_sum, nProposals, ce_sum]
    # acc_ref: SMEM (4,) f32  grid accumulator
    i = pl.program_id(0)

    @pl.when(i == 0)
    def _init():
        for k in range(4):
            acc_ref[k] = jnp.float32(0.0)

    # ---- region (coord / conf) losses: d = (act - tgt) * mask ----
    x = _sigmoid(raw_ref[0])
    y = _sigmoid(raw_ref[1])
    w = raw_ref[2]
    h = raw_ref[3]
    conf = _sigmoid(raw_ref[4])
    cm = tm_ref[5]
    cfm = tm_ref[6]
    dx = (x - tm_ref[0]) * cm
    dy = (y - tm_ref[1]) * cm
    dw = (w - tm_ref[2]) * cm
    dh = (h - tm_ref[3]) * cm
    dconf = (conf - tm_ref[4]) * cfm
    coord_sq = dx * dx + dy * dy + dw * dw + dh * dh      # one reduce for 4 channels
    acc_ref[0] += jnp.sum(coord_sq)
    acc_ref[1] += jnp.sum(dconf * dconf)
    acc_ref[2] += jnp.sum((conf > 0.25).astype(jnp.float32))

    # ---- meta-class cross entropy, lane-dense (elementwise over n_meta planes) ----
    @pl.when(i < nt_ce)
    def _ce():
        m = cls_ref[0]
        for c in range(1, n_meta):
            m = jnp.maximum(m, cls_ref[c])
        lab = lm_ref[0]          # small integer labels stored exactly in f32
        denom = jnp.zeros_like(m)
        picked = jnp.zeros_like(m)
        for c in range(n_meta):
            lc = cls_ref[c]
            denom = denom + jnp.exp(lc - m)
            picked = picked + jnp.where(lab == jnp.float32(c), lc, 0.0)
        lse = m + jnp.log(denom)
        acc_ref[3] += jnp.sum(lm_ref[1] * (lse - picked))

    for k in range(4):
        out_ref[k] = acc_ref[k]


# ----------------------------- pallas_call wrappers --------------------------
def _tile_rows(n_elems):
    rows = (n_elems + LANES - 1) // LANES
    tr = min(MAX_TILE_ROWS, ((rows + 7) // 8) * 8)
    rows_p = ((rows + tr - 1) // tr) * tr
    return rows_p, tr


def _to_tiles(x2d, rows_p, pad_value=0.0):
    # x2d: (P, N) jnp -> (P, rows_p, 128), padded on the flat axis
    p, n = x2d.shape
    total = rows_p * LANES
    if total > n:
        x2d = jnp.pad(x2d, ((0, 0), (0, total - n)), constant_values=pad_value)
    return x2d.reshape(p, rows_p, LANES)


def run_decode(raw_t, aux_t, rows_p, tr):
    nt = rows_p // tr
    return pl.pallas_call(
        decode_kernel,
        out_shape=jax.ShapeDtypeStruct((4, rows_p, LANES), jnp.float32),
        grid=(nt,),
        in_specs=[pl.BlockSpec((5, tr, LANES), lambda i: (0, i, 0)),
                  pl.BlockSpec((4, tr, LANES), lambda i: (0, i, 0))],
        out_specs=pl.BlockSpec((4, tr, LANES), lambda i: (0, i, 0)),
        compiler_params=pltpu.CompilerParams(dimension_semantics=("parallel",)),
    )(raw_t, aux_t)


def run_loss_ce(raw_t, tm_t, cls_t, lm_t, rows_l, tr_l, rows_c, tr_c, n_meta):
    nt_l = rows_l // tr_l
    nt_c = rows_c // tr_c          # always <= nt_l (CE rows = region rows / cs)
    kern = functools.partial(loss_ce_kernel, n_meta=n_meta, nt_ce=nt_c)
    ce_map = lambda i: (0, jnp.minimum(i, nt_c - 1), 0)
    return pl.pallas_call(
        kern,
        out_shape=jax.ShapeDtypeStruct((4,), jnp.float32),
        grid=(nt_l,),
        in_specs=[pl.BlockSpec((5, tr_l, LANES), lambda i: (0, i, 0)),
                  pl.BlockSpec((7, tr_l, LANES), lambda i: (0, i, 0)),
                  pl.BlockSpec((n_meta, tr_c, LANES), ce_map),
                  pl.BlockSpec((2, tr_c, LANES), ce_map)],
        out_specs=pl.BlockSpec(memory_space=pltpu.MemorySpace.SMEM),
        scratch_shapes=[pltpu.SMEM((4,), jnp.float32)],
        compiler_params=pltpu.CompilerParams(dimension_semantics=("arbitrary",)),
    )(raw_t, tm_t, cls_t, lm_t)


# ----------------------------- host-side target building ---------------------
# TODO(synk): build_targets' data-dependent GT->best-anchor assignment (Python loops +
# scatter writes) stays host-side, matching the original CPU implementation.
def bbox_iou_np(box1, box2):
    mx = min(box1[0] - box1[2] / 2.0, box2[0] - box2[2] / 2.0)
    Mx = max(box1[0] + box1[2] / 2.0, box2[0] + box2[2] / 2.0)
    my = min(box1[1] - box1[3] / 2.0, box2[1] - box2[3] / 2.0)
    My = max(box1[1] + box1[3] / 2.0, box2[1] + box2[3] / 2.0)
    w1, h1 = box1[2], box1[3]
    w2, h2 = box2[2], box2[3]
    uw = Mx - mx
    uh = My - my
    cw = w1 + w2 - uw
    ch = h1 + h2 - uh
    if cw <= 0 or ch <= 0:
        return 0.0
    carea = cw * ch
    uarea = w1 * h1 + w2 * h2 - carea
    return float(carea / uarea)


def bbox_ious_np(boxes1, boxes2):
    mx = np.minimum(boxes1[0] - boxes1[2] / 2.0, boxes2[0] - boxes2[2] / 2.0)
    Mx = np.maximum(boxes1[0] + boxes1[2] / 2.0, boxes2[0] + boxes2[2] / 2.0)
    my = np.minimum(boxes1[1] - boxes1[3] / 2.0, boxes2[1] - boxes2[3] / 2.0)
    My = np.maximum(boxes1[1] + boxes1[3] / 2.0, boxes2[1] + boxes2[3] / 2.0)
    w1, h1 = boxes1[2], boxes1[3]
    w2, h2 = boxes2[2], boxes2[3]
    uw = Mx - mx
    uh = My - my
    cw = w1 + w2 - uw
    ch = h1 + h2 - uh
    carea = cw * ch
    carea = np.where((cw <= 0) | (ch <= 0), 0.0, carea)
    uarea = w1 * h1 + w2 * h2 - carea
    return (carea / uarea).astype(np.float32)


def build_targets(pred_boxes, target, anchors, nA, nC, nH, nW,
                  noobject_scale, object_scale, sil_thresh, seen, max_boxes):
    nB = target.shape[0]
    anchor_step = len(anchors) // nA
    conf_mask = np.ones((nB, nA, nH, nW), np.float32) * noobject_scale
    coord_mask = np.zeros((nB, nA, nH, nW), np.float32)
    cls_mask = np.zeros((nB, nA, nH, nW), np.float32)
    tx = np.zeros((nB, nA, nH, nW), np.float32)
    ty = np.zeros((nB, nA, nH, nW), np.float32)
    tw = np.zeros((nB, nA, nH, nW), np.float32)
    th = np.zeros((nB, nA, nH, nW), np.float32)
    tconf = np.zeros((nB, nA, nH, nW), np.float32)
    tcls = np.zeros((nB, nA, nH, nW), np.float32)
    nAnchors = nA * nH * nW
    nPixels = nH * nW

    for b in range(nB):
        cur_pred = pred_boxes[b * nAnchors:(b + 1) * nAnchors].T  # (4, nAnchors)
        cur_ious = np.zeros(nAnchors, np.float32)
        for t in range(max_boxes):
            if target[b, t * 5 + 1] == 0:
                break
            gx = target[b, t * 5 + 1] * nW
            gy = target[b, t * 5 + 2] * nH
            gw = target[b, t * 5 + 3] * nW
            gh = target[b, t * 5 + 4] * nH
            gt = np.repeat(np.array([[gx], [gy], [gw], [gh]], np.float32), nAnchors, axis=1)
            cur_ious = np.maximum(cur_ious, bbox_ious_np(cur_pred, gt))
        cur_ious = cur_ious.reshape(nA, nH, nW)
        conf_mask[b][cur_ious > sil_thresh] = 0

    if seen < 12800:
        tx.fill(0.5)
        ty.fill(0.5)
        tw.fill(0.0)
        th.fill(0.0)
        coord_mask.fill(1.0)

    nGT = 0
    nCorrect = 0
    for b in range(nB):
        for t in range(max_boxes):  # original loops range(50); equivalent (zero marks end)
            if target[b, t * 5 + 1] == 0:
                break
            nGT += 1
            best_iou = 0.0
            best_n = -1
            gx = target[b, t * 5 + 1] * nW
            gy = target[b, t * 5 + 2] * nH
            gi = int(gx)
            gj = int(gy)
            gw = target[b, t * 5 + 3] * nW
            gh = target[b, t * 5 + 4] * nH
            gt_box = [0, 0, gw, gh]
            for n in range(nA):
                aw = anchors[anchor_step * n]
                ah = anchors[anchor_step * n + 1]
                iou = bbox_iou_np([0, 0, aw, ah], gt_box)
                if iou > best_iou:
                    best_iou = iou
                    best_n = n
            gt_box = [gx, gy, gw, gh]
            pred_box = pred_boxes[b * nAnchors + best_n * nPixels + gj * nW + gi]
            coord_mask[b, best_n, gj, gi] = 1
            cls_mask[b, best_n, gj, gi] = 1
            conf_mask[b, best_n, gj, gi] = object_scale
            tx[b, best_n, gj, gi] = target[b, t * 5 + 1] * nW - gi
            ty[b, best_n, gj, gi] = target[b, t * 5 + 2] * nH - gj
            tw[b, best_n, gj, gi] = math.log(gw / anchors[anchor_step * best_n])
            th[b, best_n, gj, gi] = math.log(gh / anchors[anchor_step * best_n + 1])
            iou = bbox_iou_np(gt_box, pred_box)
            tconf[b, best_n, gj, gi] = iou
            tcls[b, best_n, gj, gi] = target[b, t * 5]
            if iou > 0.5:
                nCorrect += 1
    return nGT, nCorrect, coord_mask, conf_mask, cls_mask, tx, ty, tw, th, tconf, tcls


# ----------------------------- RegionLossV2 ----------------------------------
class RegionLossV2:
    """YOLO region loss + softmax classification across meta-inputs (JAX/Pallas port)."""

    def __init__(self, num_classes=1, anchors=(), num_anchors=1):
        self.num_classes = num_classes
        self.anchors = list(anchors)
        self.num_anchors = num_anchors
        self.anchor_step = len(self.anchors) // num_anchors
        self.coord_scale = 1
        self.noobject_scale = 1
        self.object_scale = 5
        self.class_scale = 1
        self.thresh = 0.6
        self.seen = 0

    def forward(self, output, target):
        bs, cs = int(target.shape[0]), int(target.shape[1])
        nA, nC = self.num_anchors, self.num_classes
        nB = int(output.shape[0])           # == bs * cs (neg_ratio == 'full')
        nH, nW = int(output.shape[2]), int(output.shape[3])
        N = nB * nA * nH * nW               # region-loss elements
        Ncls = bs * nA * nC * nH * nW       # CE rows

        rows_l, tr_l = _tile_rows(N)
        rows_c, tr_c = _tile_rows(Ncls)

        out5 = output.reshape(nB, nA, 5 + nC, nH, nW).astype(jnp.float32)

        # raw planes, lane-dense flat layout (5, rows_l, 128)
        raw = out5[:, :, :5].transpose(2, 0, 1, 3, 4).reshape(5, N)
        raw_t = _to_tiles(raw, rows_l, pad_value=RAW_PAD)

        # grid / anchor broadcasts materialized flat (4, rows_l, 128)
        anchors_arr = jnp.asarray(self.anchors, dtype=jnp.float32).reshape(nA, self.anchor_step)
        gx = jnp.broadcast_to(jnp.arange(nW, dtype=jnp.float32), (nB, nA, nH, nW))
        gy = jnp.broadcast_to(jnp.arange(nH, dtype=jnp.float32)[:, None], (nB, nA, nH, nW))
        aw = jnp.broadcast_to(anchors_arr[:, 0][None, :, None, None], (nB, nA, nH, nW))
        ah = jnp.broadcast_to(anchors_arr[:, 1][None, :, None, None], (nB, nA, nH, nW))
        aux_t = _to_tiles(jnp.stack([gx, gy, aw, ah]).reshape(4, N), rows_l, 0.0)

        # meta-class logits: plane c holds class-c logit for every (b, anchor, cell) row
        clsr = out5[:, :, 5:5 + nC].reshape(bs, cs, nA * nC * nH * nW)
        cls_t = _to_tiles(jnp.transpose(clsr, (1, 0, 2)).reshape(cs, Ncls), rows_c, 0.0)

        # --- Pallas kernel 1: pred-box decoding (dispatched before host sync) ---
        pred_t = run_decode(raw_t, aux_t, rows_l, tr_l)

        # host round-trip: only the 4 pred planes go to host (mirrors convert2cpu)
        pred_boxes = np.asarray(jax.device_get(pred_t)).reshape(4, -1)[:, :N].T
        target2 = target.reshape(-1, target.shape[-1])
        target_np = np.asarray(jax.device_get(target2)).astype(np.float32)
        inds = np.arange(nB)                       # neg_filter with neg_ratio == 'full'
        counts, _ = np.histogram(inds, bins=bs, range=(0, bs * cs))

        (nGT, nCorrect, coord_mask, conf_mask, cls_mask, tx, ty, tw, th, tconf, tcls) = \
            build_targets(pred_boxes, target_np, self.anchors, nA, nC, nH, nW,
                          self.noobject_scale, self.object_scale, self.thresh,
                          self.seen, cfg.max_boxes)

        # group cls_mask / tcls over the cs meta-class rows of each batch entry
        idx_start = 0
        cls_mask_list, tcls_list = [], []
        for i in range(len(counts)):
            if counts[i] == 0:
                cur_mask = np.zeros((nA, nH, nW), np.float32)
                cur_tcls = np.zeros((nA, nH, nW), np.float32)
            else:
                cur_mask = cls_mask[idx_start:idx_start + counts[i]].sum(axis=0)
                cur_tcls = tcls[idx_start:idx_start + counts[i]].sum(axis=0)
            cls_mask_list.append(cur_mask)
            tcls_list.append(cur_tcls)
            idx_start += counts[i]
        cls_sel = (np.stack(cls_mask_list) == 1).astype(np.float32).reshape(-1)
        labels = np.stack(tcls_list).astype(np.float32).reshape(-1)

        # single packed host->device upload: targets + masks (7 planes)
        tm = np.zeros((7, rows_l * LANES), np.float32)
        tm[0, :N] = tx.reshape(-1)
        tm[1, :N] = ty.reshape(-1)
        tm[2, :N] = tw.reshape(-1)
        tm[3, :N] = th.reshape(-1)
        tm[4, :N] = tconf.reshape(-1)
        tm[5, :N] = coord_mask.reshape(-1)
        tm[6, :N] = np.sqrt(conf_mask).reshape(-1)
        tm_t = jnp.asarray(tm.reshape(7, rows_l, LANES))

        lm = np.zeros((2, rows_c * LANES), np.float32)
        lm[0, :Ncls] = labels
        lm[1, :Ncls] = cls_sel
        lm_t = jnp.asarray(lm.reshape(2, rows_c, LANES))

        # --- Pallas kernel 2: fused masked-MSE sums + proposal count + CE ---
        sums = run_loss_ce(raw_t, tm_t, cls_t, lm_t, rows_l, tr_l, rows_c, tr_c, cs)

        nProposals = int(jax.device_get(sums[2]))
        _ = (nGT, nCorrect, nProposals)   # stats available (original prints them)

        loss_coord = self.coord_scale * sums[0] / 2.0   # = loss_x+loss_y+loss_w+loss_h
        loss_conf = sums[1] / 2.0
        loss_cls = self.class_scale * sums[3]
        return loss_coord + loss_conf + loss_cls


# ----------------------------- main -------------------------------------------
if __name__ == "__main__":
    bs, cs = 2, 3          # batch, meta-classes
    nA, nC = 2, 1          # anchors, per-anchor classes (module assumes nC == 1)
    nH = nW = 8
    anchors = [1.0, 1.5, 2.8, 3.2]     # deterministic anchor priors
    max_boxes = cfg.max_boxes

    key = jax.random.PRNGKey(0)
    k1, k2, k3, k4 = jax.random.split(key, 4)

    # output: PyTorch NCHW conv output -> (bs*cs, nA*(5+nC), nH, nW)
    output = jax.random.normal(k1, (bs * cs, nA * (5 + nC), nH, nW), dtype=jnp.float32)

    # target: (bs, cs, 5*max_boxes), rows of [class, x, y, w, h]; x == 0 marks "no box"
    tgt_np = np.zeros((bs, cs, 5 * max_boxes), np.float32)
    xy = np.array(jax.device_get(jax.random.uniform(k2, (bs, cs, max_boxes, 2),
                                                    minval=0.08, maxval=0.92)))
    wh = np.array(jax.device_get(jax.random.uniform(k3, (bs, cs, max_boxes, 2),
                                                    minval=0.10, maxval=0.45)))
    nbox = np.array(jax.device_get(jax.random.randint(k4, (bs, cs), 0, max_boxes + 1)))
    nbox[0, 0] = max(1, int(nbox[0, 0]))  # ensure at least one GT box overall
    for b in range(bs):
        for c in range(cs):
            for t in range(int(nbox[b, c])):
                tgt_np[b, c, t * 5 + 0] = float(c % cs)   # meta-class label in [0, cs)
                tgt_np[b, c, t * 5 + 1] = xy[b, c, t, 0]
                tgt_np[b, c, t * 5 + 2] = xy[b, c, t, 1]
                tgt_np[b, c, t * 5 + 3] = wh[b, c, t, 0]
                tgt_np[b, c, t * 5 + 4] = wh[b, c, t, 1]
    target = jnp.asarray(tgt_np)

    loss_mod = RegionLossV2(num_classes=nC, anchors=anchors, num_anchors=nA)
    loss = loss_mod.forward(output, target)
    loss = jax.block_until_ready(loss)
    assert np.isfinite(float(loss))
    print("KERNEL_OK")
</pallas_src>

<mosaic_0001>
module attributes {stable_mosaic.version = 11 : i64} {
  func.func @decode_kernel(%arg0: i32, %arg1: memref<5x8x128xf32, #tpu.memory_space<vmem>>, %arg2: memref<4x8x128xf32, #tpu.memory_space<vmem>>, %arg3: memref<4x8x128xf32, #tpu.memory_space<vmem>>) attributes {dimension_semantics = [#tpu.dimension_semantics<parallel>], iteration_bounds = array<i64: 1>, scalar_prefetch = 0 : i64, scratch_operands = 0 : i64, tpu.core_type = #tpu.core_type<tc>, window_params = [{transform_indices = @transform_0, window_bounds = array<i64: 5, 8, 128>}, {transform_indices = @transform_1, window_bounds = array<i64: 4, 8, 128>}, {transform_indices = @transform_2, window_bounds = array<i64: 4, 8, 128>}]} {
    %c0 = arith.constant 0 : index
    %c0_0 = arith.constant 0 : index
    %c0_1 = arith.constant 0 : index
    %0 = vector.load %arg1[%c0, %c0_0, %c0_1] : memref<5x8x128xf32, #tpu.memory_space<vmem>>, vector<1x8x128xf32>
    %1 = vector.shape_cast %0 : vector<1x8x128xf32> to vector<8x128xf32>
    %cst = arith.constant 0.000000e+00 : f32
    %2 = vector.broadcast %cst : f32 to vector<8x128xf32>
    %3 = arith.subf %2, %1 : vector<8x128xf32>
    %4 = math.exp %3 : vector<8x128xf32>
    %cst_2 = arith.constant 1.000000e+00 : f32
    %5 = vector.broadcast %cst_2 : f32 to vector<8x128xf32>
    %6 = arith.addf %5, %4 : vector<8x128xf32>
    %7 = tpu.reciprocal %6 {approx = true} : vector<8x128xf32> -> vector<8x128xf32>
    %c0_3 = arith.constant 0 : index
    %c0_4 = arith.constant 0 : index
    %c0_5 = arith.constant 0 : index
    %8 = vector.load %arg2[%c0_3, %c0_4, %c0_5] : memref<4x8x128xf32, #tpu.memory_space<vmem>>, vector<1x8x128xf32>
    %9 = vector.shape_cast %8 : vector<1x8x128xf32> to vector<8x128xf32>
    %10 = arith.addf %7, %9 : vector<8x128xf32>
    %c0_6 = arith.constant 0 : index
    %c0_7 = arith.constant 0 : index
    %c0_8 = arith.constant 0 : index
    %11 = vector.load %arg3[%c0_6, %c0_7, %c0_8] : memref<4x8x128xf32, #tpu.memory_space<vmem>>, vector<1x8x128xf32>
    %12 = vector.shape_cast %11 : vector<1x8x128xf32> to vector<8x128xf32>
    %13 = vector.shape_cast %10 : vector<8x128xf32> to vector<1x8x128xf32>
    tpu.vector_store %arg3[%c0_6, %c0_7, %c0_8], %13 {strides = array<i32>} : memref<4x8x128xf32, #tpu.memory_space<vmem>>, vector<1x8x128xf32>,
    %c1 = arith.constant 1 : index
    %c0_9 = arith.constant 0 : index
    %c0_10 = arith.constant 0 : index
    %14 = vector.load %arg1[%c1, %c0_9, %c0_10] : memref<5x8x128xf32, #tpu.memory_space<vmem>>, vector<1x8x128xf32>
    %15 = vector.shape_cast %14 : vector<1x8x128xf32> to vector<8x128xf32>
    %cst_11 = arith.constant 0.000000e+00 : f32
    %16 = vector.broadcast %cst_11 : f32 to vector<8x128xf32>
    %17 = arith.subf %16, %15 : vector<8x128xf32>
    %18 = math.exp %17 : vector<8x128xf32>
    %cst_12 = arith.constant 1.000000e+00 : f32
    %19 = vector.broadcast %cst_12 : f32 to vector<8x128xf32>
    %20 = arith.addf %19, %18 : vector<8x128xf32>
    %21 = tpu.reciprocal %20 {approx = true} : vector<8x128xf32> -> vector<8x128xf32>
    %c1_13 = arith.constant 1 : index
    %c0_14 = arith.constant 0 : index
    %c0_15 = arith.constant 0 : index
    %22 = vector.load %arg2[%c1_13, %c0_14, %c0_15] : memref<4x8x128xf32, #tpu.memory_space<vmem>>, vector<1x8x128xf32>
    %23 = vector.shape_cast %22 : vector<1x8x128xf32> to vector<8x128xf32>
    %24 = arith.addf %21, %23 : vector<8x128xf32>
    %c1_16 = arith.constant 1 : index
    %c0_17 = arith.constant 0 : index
    %c0_18 = arith.constant 0 : index
    %25 = vector.load %arg3[%c1_16, %c0_17, %c0_18] : memref<4x8x128xf32, #tpu.memory_space<vmem>>, vector<1x8x128xf32>
    %26 = vector.shape_cast %25 : vector<1x8x128xf32> to vector<8x128xf32>
    %27 = vector.shape_cast %24 : vector<8x128xf32> to vector<1x8x128xf32>
    tpu.vector_store %arg3[%c1_16, %c0_17, %c0_18], %27 {strides = array<i32>} : memref<4x8x128xf32, #tpu.memory_space<vmem>>, vector<1x8x128xf32>,
    %c2 = arith.constant 2 : index
    %c0_19 = arith.constant 0 : index
    %c0_20 = arith.constant 0 : index
    %28 = vector.load %arg1[%c2, %c0_19, %c0_20] : memref<5x8x128xf32, #tpu.memory_space<vmem>>, vector<1x8x128xf32>
    %29 = vector.shape_cast %28 : vector<1x8x128xf32> to vector<8x128xf32>
    %30 = math.exp %29 : vector<8x128xf32>
    %c2_21 = arith.constant 2 : index
    %c0_22 = arith.constant 0 : index
    %c0_23 = arith.constant 0 : index
    %31 = vector.load %arg2[%c2_21, %c0_22, %c0_23] : memref<4x8x128xf32, #tpu.memory_space<vmem>>, vector<1x8x128xf32>
    %32 = vector.shape_cast %31 : vector<1x8x128xf32> to vector<8x128xf32>
    %33 = arith.mulf %30, %32 : vector<8x128xf32>
    %c2_24 = arith.constant 2 : index
    %c0_25 = arith.constant 0 : index
    %c0_26 = arith.constant 0 : index
    %34 = vector.load %arg3[%c2_24, %c0_25, %c0_26] : memref<4x8x128xf32, #tpu.memory_space<vmem>>, vector<1x8x128xf32>
    %35 = vector.shape_cast %34 : vector<1x8x128xf32> to vector<8x128xf32>
    %36 = vector.shape_cast %33 : vector<8x128xf32> to vector<1x8x128xf32>
    tpu.vector_store %arg3[%c2_24, %c0_25, %c0_26], %36 {strides = array<i32>} : memref<4x8x128xf32, #tpu.memory_space<vmem>>, vector<1x8x128xf32>,
    %c3 = arith.constant 3 : index
    %c0_27 = arith.constant 0 : index
    %c0_28 = arith.constant 0 : index
    %37 = vector.load %arg1[%c3, %c0_27, %c0_28] : memref<5x8x128xf32, #tpu.memory_space<vmem>>, vector<1x8x128xf32>
    %38 = vector.shape_cast %37 : vector<1x8x128xf32> to vector<8x128xf32>
    %39 = math.exp %38 : vector<8x128xf32>
    %c3_29 = arith.constant 3 : index
    %c0_30 = arith.constant 0 : index
    %c0_31 = arith.constant 0 : index
    %40 = vector.load %arg2[%c3_29, %c0_30, %c0_31] : memref<4x8x128xf32, #tpu.memory_space<vmem>>, vector<1x8x128xf32>
    %41 = vector.shape_cast %40 : vector<1x8x128xf32> to vector<8x128xf32>
    %42 = arith.mulf %39, %41 : vector<8x128xf32>
    %c3_32 = arith.constant 3 : index
    %c0_33 = arith.constant 0 : index
    %c0_34 = arith.constant 0 : index
    %43 = vector.load %arg3[%c3_32, %c0_33, %c0_34] : memref<4x8x128xf32, #tpu.memory_space<vmem>>, vector<1x8x128xf32>
    %44 = vector.shape_cast %43 : vector<1x8x128xf32> to vector<8x128xf32>
    %45 = vector.shape_cast %42 : vector<8x128xf32> to vector<1x8x128xf32>
    tpu.vector_store %arg3[%c3_32, %c0_33, %c0_34], %45 {strides = array<i32>} : memref<4x8x128xf32, #tpu.memory_space<vmem>>, vector<1x8x128xf32>,
    return
  }
  func.func @transform_0(%arg0: i32) -> (i32, i32, i32) {
    %c0_i32 = arith.constant 0 : i32
    %c0_i32_0 = arith.constant 0 : i32
    %c0_i32_1 = arith.constant 0 : i32
    return %c0_i32, %arg0, %c0_i32_0 : i32, i32, i32
  }
  func.func @transform_1(%arg0: i32) -> (i32, i32, i32) {
    %c0_i32 = arith.constant 0 : i32
    %c0_i32_0 = arith.constant 0 : i32
    %c0_i32_1 = arith.constant 0 : i32
    return %c0_i32, %arg0, %c0_i32_0 : i32, i32, i32
  }
  func.func @transform_2(%arg0: i32) -> (i32, i32, i32) {
    %c0_i32 = arith.constant 0 : i32
    %c0_i32_0 = arith.constant 0 : i32
    %c0_i32_1 = arith.constant 0 : i32
    return %c0_i32, %arg0, %c0_i32_0 : i32, i32, i32
  }
}

</mosaic_0001>

<bundles_post_ra>
// kernel: tpu_custom_call.1
= control target key start
LH: loop header
LB: loop body
LE: loop exit
PB: predicated region body
PF: predicated region fallthrough
CT: control target
= control target key end

     0   :  { %7 = vsyncpa [#allocation3], 0  ;;  %s251_s0 = inlined_call_operand.hbm [shape: f32[5,8,128], index: 0, kind: input, shape index: {}]   ;;  %s252_s1 = inlined_call_operand.hbm [shape: f32[4,8,128], index: 1, kind: input, shape index: {}]   ;;  %s253_s2 = inlined_call_operand.hbm [shape: f32[4,8,128], index: 2, kind: output, shape index: {}]  }
   0x1   :  { %8 = vsyncpa [#allocation6], 0 }
   0x2   :  { %9 = vsyncpa [#allocation4], 0  ;;  %s186_s9 = smov [#allocation2]   ;;  %s114_s13 = scalar_lea.hbm %s251_s0, 640 }
   0x3   :  { %s15_s10 = sshll.u32 %s186_s9, 4  ;;  %p115_p0 = scmp.ne.s32.totalorder %s251_s0, %s114_s13  ;;  %s16_s10 = int_to_ptr.vmem [resolvable:$true] %s15_s10 }
   0x4   :  { %p118_p1 = scmp.lt.u32.totalorder %s114_s13, %s251_s0 }
   0x6   :  { %p120_p2 = pnand %p118_p1, %p115_p0 }
   0x8   :  { %123 = shalt.err (!%p120_p2)
}
   0x9   :  { %s124_s18 = scalar_lea.vmem %s16_s10, 640  ;;  %p129_p4 = scmp.lt.s32.totalorder %s16_s10, %s16_s10 }
   0xa   :  { %p125_p3 = scmp.ne.s32.totalorder %s16_s10, %s124_s18  ;;  %p130_p5 = scmp.lt.s32.totalorder %s124_s18, %s124_s18 }
   0xc   :  { %p131_p6 = por %p130_p5, %p129_p4 }
   0xe   :  { %p132_p7 = pnand %p131_p6, %p125_p3 }
  0x10   :  { %135 = shalt.err (!%p132_p7)
}
  0x11   :  { %s187_s19 = smov 128   ;;  %s188_s20 = smov 8  }
  0x12   :  { %21 = dma.hbm_to_vmem [thread:$0]  %s251_s0, 640, %s16_s10, [#allocation3], %s187_s19, %s187_s19, %s188_s20  }
  0x13   :  { %s189_s23 = smov [#allocation5]   ;;  %s136_s27 = scalar_lea.hbm %s252_s1, 512 }
  0x14   :  { %s27_s24 = sshll.u32 %s189_s23, 4  ;;  %p137_p8 = scmp.ne.s32.totalorder %s252_s1, %s136_s27  ;;  %s28_s24 = int_to_ptr.vmem [resolvable:$true] %s27_s24 }
  0x15   :  { %p140_p9 = scmp.lt.u32.totalorder %s136_s27, %s252_s1 }
  0x17   :  { %p142_p10 = pnand %p140_p9, %p137_p8 }
  0x19   :  { %145 = shalt.err (!%p142_p10)
}
  0x1a   :  { %s146_s4 = scalar_lea.vmem %s28_s24, 512  ;;  %p151_p12 = scmp.lt.s32.totalorder %s28_s24, %s28_s24 }
  0x1b   :  { %p147_p11 = scmp.ne.s32.totalorder %s28_s24, %s146_s4  ;;  %p152_p13 = scmp.lt.s32.totalorder %s146_s4, %s146_s4 }
  0x1d   :  { %p153_p0 = por %p152_p13, %p151_p12 }
  0x1f   :  { %p154_p1 = pnand %p153_p0, %p147_p11 }
  0x21   :  { %157 = shalt.err (!%p154_p1)
}
  0x22   :  { %33 = dma.hbm_to_vmem [thread:$0]  %s252_s1, 512, %s28_s24, [#allocation6], %s187_s19, %s187_s19, %s188_s20  }
  0x23   :  { %180 = dma.done.wait [#allocation3], 640  }
  0x24   :  { %181 = vsyncadd [#allocation3], 4294966656 }
  0x25   :  { %182 = dma.done.wait [#allocation6], 512  }
  0x26   :  { %183 = vsyncadd [#allocation6], 4294966784  ;;  %v40_v0 = vld [vmem:[#allocation2] sm:$0xff]  ;;  %v50_v1 = vld [vmem:[#allocation2 + $0x8] sm:$0xff]  ;;  %s190_s1 = smov [#allocation7]  }
  0x27   :  { %v41_v2 = vsub.f32 0.0, %v40_v0  ;;  %v51_v3 = vsub.f32 0.0, %v50_v1  ;;  %v62_v4 = vld [vmem:[#allocation2 + $0x10] sm:$0xff]  ;;  %v71_v6 = vld [vmem:[#allocation2 + $0x18] sm:$0xff]  ;;  %v75_v14 = vld [vmem:[#allocation5 + $0x18] sm:$0xff]  ;;  %s84_s6 = sshll.u32 %s190_s1, 4  ;;  %s85_s6 = int_to_ptr.vmem [resolvable:$true] %s84_s6 }
  0x28   :  { %v63_v5 = vmul.f32 1.442695, %v62_v4  ;;  %v72_v9 = vmul.f32 1.442695, %v71_v6  ;;  %v66_v10 = vld [vmem:[#allocation5 + $0x10] sm:$0xff]  ;;  %v46_v20 = vld [vmem:[#allocation5] sm:$0xff]  ;;  %p163_p3 = scmp.lt.s32.totalorder %s85_s6, %s85_s6 }
  0x29   :  { %v42_v7 = vmul.f32 1.442695, %v41_v2  ;;  %v52_v8 = vmul.f32 1.442695, %v51_v3  ;;  %v57_v21 = vld [vmem:[#allocation5 + $0x8] sm:$0xff]  ;;  %s158_s7 = scalar_lea.vmem %s85_s6, 512 }
  0x2a   :  { %102 = vpow2.f32 %v63_v5  ;;  %p159_p2 = scmp.ne.s32.totalorder %s85_s6, %s158_s7  ;;  %p164_p4 = scmp.lt.s32.totalorder %s158_s7, %s158_s7 }
  0x2b   :  { %104 = vpow2.f32 %v42_v7 }
  0x2c   :  { %106 = vpow2.f32 %v52_v8  ;;  %p165_p5 = por %p164_p4, %p163_p3 }
  0x2d   :  { %108 = vpow2.f32 %v72_v9 }
  0x2e   :  { %p166_p6 = pnand %p165_p5, %p159_p2 }
  0x34   :  { %v103_v11 = vpop.eup %102 }
  0x35   :  { %v105_v12 = vpop.eup %104  ;;  %v67_v13 = vmul.f32 %v103_v11, %v66_v10 }
  0x36   :  { %v107_v15 = vpop.eup %106  ;;  %v44_v16 = vadd.f32 1.0, %v105_v12 }
  0x37   :  { %v109_v17 = vpop.eup %108  ;;  %v54_v18 = vadd.f32 1.0, %v107_v15  ;;  %69 = vst [vmem:[#allocation7 + $0x10] sm:$0xff] %v67_v13 }
  0x38   :  { %110 = vrcp.f32 %v44_v16  ;;  %v76_v19 = vmul.f32 %v109_v17, %v75_v14 }
  0x39   :  { %112 = vrcp.f32 %v54_v18 }
  0x3a   :  { %78 = vst [vmem:[#allocation7 + $0x18] sm:$0xff] %v76_v19 }
  0x42   :  { %v111_v22 = vpop.eup %110 }
  0x43   :  { %v113_v23 = vpop.eup %112  ;;  %v47_v24 = vadd.f32 %v111_v22, %v46_v20 }
  0x44   :  { %v58_v25 = vadd.f32 %v113_v23, %v57_v21 }
  0x45   :  { %48 = vst [vmem:[#allocation7] sm:$0xff] %v47_v24 }
  0x46   :  { %60 = vst [vmem:[#allocation7 + $0x8] sm:$0xff] %v58_v25 }
  0x47   :  { %169 = shalt.err (!%p166_p6)
}
  0x48   :  { %s170_s10 = scalar_lea.hbm %s253_s2, 512 }
  0x49   :  { %p171_p7 = scmp.ne.s32.totalorder %s253_s2, %s170_s10  ;;  %p174_p8 = scmp.lt.u32.totalorder %s170_s10, %s253_s2 }
  0x4b   :  { %p176_p9 = pnand %p174_p8, %p171_p7 }
  0x4d   :  { %179 = shalt.err (!%p176_p9)
}
  0x4e   :  { %90 = dma.vmem_to_hbm [thread:$0]  %s85_s6, 512, %s253_s2, [#allocation4], %s187_s19, %s187_s19, %s188_s20  }
  0x4f   :  { %184 = dma.done.wait [#allocation4], 512  }
  0x50   :  { %185 = vsyncadd [#allocation4], 4294966784 }
  0x51   :  { %94 = vsyncpa [#allocation3], 1 }
  0x52   :  { %95 = vsyncpa [#allocation6], 1 }
  0x53   :  { %96 = vsyncpa [#allocation4], 1 }

</bundles_post_ra>
